<compile_context>
chip_gen: v6e
topology: v6e:2x2x1
jax: 0.10.0
libtpu: 0.0.40
codegen_flags: <defaults>
</compile_context>

<pallas_src>
import functools

import jax
import jax.numpy as jnp
from jax import lax
from jax.experimental import pallas as pl
from jax.experimental.pallas import tpu as pltpu

_LANE = 128


def _round_up(x, m):
    return (x + m - 1) // m * m


def _stats_kernel(x1_ref, x2_ref, g_ref, b_ref, scale_ref, shift_ref,
                  sum_acc, sq_acc, *, eps, inv_count, m_tile):
    """Pass A: per-channel sum / sum-of-squares -> folded (scale, shift)."""
    mi = pl.program_id(1)

    @pl.when(mi == 0)
    def _():
        sum_acc[...] = jnp.zeros_like(sum_acc)
        sq_acc[...] = jnp.zeros_like(sq_acc)

    fuse = x1_ref[...] + x2_ref[...]                       # (C_TILE, M_TILE)

    # Accumulate 128-lane-aligned chunks with plain VPU adds; defer the
    # cross-lane (XLU) reduction to the single finalize step below.
    ps = sum_acc[...]
    pq = sq_acc[...]
    for k in range(m_tile // _LANE):
        c = fuse[:, k * _LANE:(k + 1) * _LANE]
        ps = ps + c
        pq = pq + c * c
    sum_acc[...] = ps
    sq_acc[...] = pq

    @pl.when(mi == pl.num_programs(1) - 1)
    def _():
        s = jnp.sum(sum_acc[...], axis=1, keepdims=True)   # (C_TILE, 1)
        q = jnp.sum(sq_acc[...], axis=1, keepdims=True)
        mean = s * inv_count
        var = jnp.maximum(q * inv_count - mean * mean, 0.0)   # biased (training) var
        inv_std = lax.rsqrt(var + eps)
        scale = g_ref[...] * inv_std
        scale_ref[...] = scale
        shift_ref[...] = b_ref[...] - mean * scale


def _norm_kernel(x1_ref, x2_ref, scale_ref, shift_ref, out_ref):
    """Pass B: y = relu((x1 + x2) * scale + shift) with folded affine."""
    fuse = x1_ref[...] + x2_ref[...]
    y = fuse * scale_ref[...] + shift_ref[...]
    out_ref[...] = jnp.maximum(y, 0.0)


def _fuse_amp_to_phase_impl(x1, x2, gamma, beta, eps):
    N, C, L = x1.shape
    M = N * L

    # Lane-dense layout: one row per channel, the (N*L) reduction axis on lanes.
    x1r = jnp.transpose(x1, (1, 0, 2)).reshape(C, M).astype(jnp.float32)
    x2r = jnp.transpose(x2, (1, 0, 2)).reshape(C, M).astype(jnp.float32)

    # Tile sizes: multiples of (8, 128), modest enough for every generation's VMEM.
    c_tile = min(_round_up(C, 8), 64)
    m_tile = min(_round_up(M, _LANE), 1024)
    cp = _round_up(C, c_tile)
    mp = _round_up(M, m_tile)

    # Zero padding is stat-safe: we divide by the true (unpadded) count and the
    # padded zeros contribute nothing to sum / sum-of-squares.
    x1p = jnp.pad(x1r, ((0, cp - C), (0, mp - M)))
    x2p = jnp.pad(x2r, ((0, cp - C), (0, mp - M)))
    g = jnp.pad(gamma.astype(jnp.float32).reshape(C, 1), ((0, cp - C), (0, 0)))
    b = jnp.pad(beta.astype(jnp.float32).reshape(C, 1), ((0, cp - C), (0, 0)))

    grid = (cp // c_tile, mp // m_tile)
    data_spec = pl.BlockSpec((c_tile, m_tile), lambda ci, mi: (ci, mi))
    chan_spec = pl.BlockSpec((c_tile, 1), lambda ci, mi: (ci, 0))

    # ---- Pass A: per-channel batch statistics -> folded scale/shift ----
    stats = functools.partial(
        _stats_kernel, eps=float(eps), inv_count=1.0 / float(N * L), m_tile=m_tile)
    scale, shift = pl.pallas_call(
        stats,
        out_shape=(jax.ShapeDtypeStruct((cp, 1), jnp.float32),
                   jax.ShapeDtypeStruct((cp, 1), jnp.float32)),
        grid=grid,
        in_specs=[data_spec, data_spec, chan_spec, chan_spec],
        out_specs=(chan_spec, chan_spec),
        scratch_shapes=[pltpu.VMEM((c_tile, _LANE), jnp.float32),
                        pltpu.VMEM((c_tile, _LANE), jnp.float32)],
        compiler_params=pltpu.CompilerParams(
            dimension_semantics=("parallel", "arbitrary")),
    )(x1p, x2p, g, b)

    # ---- Pass B: normalize + ReLU (fully independent tiles, streaming) ----
    yp = pl.pallas_call(
        _norm_kernel,
        out_shape=jax.ShapeDtypeStruct((cp, mp), jnp.float32),
        grid=grid,
        in_specs=[data_spec, data_spec, chan_spec, chan_spec],
        out_specs=data_spec,
        compiler_params=pltpu.CompilerParams(
            dimension_semantics=("parallel", "parallel")),
    )(x1p, x2p, scale, shift)

    y = yp[:C, :M].reshape(C, N, L)
    return jnp.transpose(y, (1, 0, 2))


_fuse_jit = jax.jit(_fuse_amp_to_phase_impl, static_argnums=(4,))


def fuse_amp_to_phase(x1, x2, gamma, beta, *, eps=1e-5):
    """x1, x2: (N, C, L) float32.  gamma, beta: (C,) float32 (BatchNorm1d affine)."""
    assert x1.shape == x2.shape and x1.ndim == 3
    return _fuse_jit(x1, x2, gamma, beta, float(eps))


def _reference(x1, x2, gamma, beta, eps=1e-5):
    fuse = x1 + x2
    mean = jnp.mean(fuse, axis=(0, 2), keepdims=True)
    var = jnp.mean((fuse - mean) ** 2, axis=(0, 2), keepdims=True)
    xhat = (fuse - mean) * lax.rsqrt(var + eps)
    y = xhat * gamma.reshape(1, -1, 1) + beta.reshape(1, -1, 1)
    return jnp.maximum(y, 0.0)


if __name__ == "__main__":
    key = jax.random.PRNGKey(0)
    k1, k2 = jax.random.split(key)

    N, C, L = 2, 4, 16          # small (N, C, L) consistent with BatchNorm1d input
    x1 = jax.random.normal(k1, (N, C, L), dtype=jnp.float32)
    x2 = jax.random.normal(k2, (N, C, L), dtype=jnp.float32)

    # PyTorch BatchNorm1d default affine init: weight=1, bias=0
    gamma = jnp.ones((C,), dtype=jnp.float32)
    beta = jnp.zeros((C,), dtype=jnp.float32)

    out = fuse_amp_to_phase(x1, x2, gamma, beta, eps=1e-5)
    out = jax.block_until_ready(out)

    ref = _reference(x1, x2, gamma, beta, eps=1e-5)
    assert out.shape == (N, C, L)
    assert jnp.allclose(out, ref, atol=1e-4, rtol=1e-4), "mismatch vs reference"

    print("KERNEL_OK")
</pallas_src>

<mosaic_0001>
module attributes {stable_mosaic.version = 11 : i64} {
  func.func @_norm_kernel(%arg0: i32, %arg1: i32, %arg2: memref<8x128xf32, #tpu.memory_space<vmem>>, %arg3: memref<8x128xf32, #tpu.memory_space<vmem>>, %arg4: memref<8x1xf32, #tpu.memory_space<vmem>>, %arg5: memref<8x1xf32, #tpu.memory_space<vmem>>, %arg6: memref<8x128xf32, #tpu.memory_space<vmem>>) attributes {dimension_semantics = [#tpu.dimension_semantics<parallel>, #tpu.dimension_semantics<parallel>], iteration_bounds = array<i64: 1, 1>, scalar_prefetch = 0 : i64, scratch_operands = 0 : i64, tpu.core_type = #tpu.core_type<tc>, window_params = [{transform_indices = @transform_0, window_bounds = array<i64: 8, 128>}, {transform_indices = @transform_1, window_bounds = array<i64: 8, 128>}, {transform_indices = @transform_2, window_bounds = array<i64: 8, 1>}, {transform_indices = @transform_3, window_bounds = array<i64: 8, 1>}, {transform_indices = @transform_4, window_bounds = array<i64: 8, 128>}]} {
    %c0 = arith.constant 0 : index
    %c0_0 = arith.constant 0 : index
    %0 = vector.load %arg2[%c0, %c0_0] : memref<8x128xf32, #tpu.memory_space<vmem>>, vector<8x128xf32>
    %c0_1 = arith.constant 0 : index
    %c0_2 = arith.constant 0 : index
    %1 = vector.load %arg3[%c0_1, %c0_2] : memref<8x128xf32, #tpu.memory_space<vmem>>, vector<8x128xf32>
    %2 = arith.addf %0, %1 : vector<8x128xf32>
    %c0_3 = arith.constant 0 : index
    %c0_4 = arith.constant 0 : index
    %3 = vector.load %arg4[%c0_3, %c0_4] : memref<8x1xf32, #tpu.memory_space<vmem>>, vector<8x1xf32>
    %4 = vector.broadcast %3 : vector<8x1xf32> to vector<8x128xf32>
    %5 = arith.mulf %2, %4 : vector<8x128xf32>
    %c0_5 = arith.constant 0 : index
    %c0_6 = arith.constant 0 : index
    %6 = vector.load %arg5[%c0_5, %c0_6] : memref<8x1xf32, #tpu.memory_space<vmem>>, vector<8x1xf32>
    %7 = vector.broadcast %6 : vector<8x1xf32> to vector<8x128xf32>
    %8 = arith.addf %5, %7 : vector<8x128xf32>
    %cst = arith.constant 0.000000e+00 : f32
    %9 = vector.broadcast %cst : f32 to vector<8x128xf32>
    %10 = arith.maximumf %8, %9 : vector<8x128xf32>
    %c0_7 = arith.constant 0 : index
    %c0_8 = arith.constant 0 : index
    %11 = vector.load %arg6[%c0_7, %c0_8] : memref<8x128xf32, #tpu.memory_space<vmem>>, vector<8x128xf32>
    tpu.vector_store %arg6[%c0_7, %c0_8], %10 {strides = array<i32>} : memref<8x128xf32, #tpu.memory_space<vmem>>, vector<8x128xf32>,
    return
  }
  func.func @transform_0(%arg0: i32, %arg1: i32) -> (i32, i32) {
    %c0_i32 = arith.constant 0 : i32
    return %arg0, %arg1 : i32, i32
  }
  func.func @transform_1(%arg0: i32, %arg1: i32) -> (i32, i32) {
    %c0_i32 = arith.constant 0 : i32
    return %arg0, %arg1 : i32, i32
  }
  func.func @transform_2(%arg0: i32, %arg1: i32) -> (i32, i32) {
    %c0_i32 = arith.constant 0 : i32
    %c0_i32_0 = arith.constant 0 : i32
    return %arg0, %c0_i32 : i32, i32
  }
  func.func @transform_3(%arg0: i32, %arg1: i32) -> (i32, i32) {
    %c0_i32 = arith.constant 0 : i32
    %c0_i32_0 = arith.constant 0 : i32
    return %arg0, %c0_i32 : i32, i32
  }
  func.func @transform_4(%arg0: i32, %arg1: i32) -> (i32, i32) {
    %c0_i32 = arith.constant 0 : i32
    return %arg0, %arg1 : i32, i32
  }
}

module attributes {stable_mosaic.version = 11 : i64} {
  func.func @_stats_kernel(%arg0: i32, %arg1: i32, %arg2: memref<8x128xf32, #tpu.memory_space<vmem>>, %arg3: memref<8x128xf32, #tpu.memory_space<vmem>>, %arg4: memref<8x1xf32, #tpu.memory_space<vmem>>, %arg5: memref<8x1xf32, #tpu.memory_space<vmem>>, %arg6: memref<8x1xf32, #tpu.memory_space<vmem>>, %arg7: memref<8x1xf32, #tpu.memory_space<vmem>>, %arg8: memref<8x128xf32, #tpu.memory_space<vmem>>, %arg9: memref<8x128xf32, #tpu.memory_space<vmem>>) attributes {dimension_semantics = [#tpu.dimension_semantics<parallel>, #tpu.dimension_semantics<arbitrary>], iteration_bounds = array<i64: 1, 1>, scalar_prefetch = 0 : i64, scratch_operands = 2 : i64, tpu.core_type = #tpu.core_type<tc>, window_params = [{transform_indices = @transform_0, window_bounds = array<i64: 8, 128>}, {transform_indices = @transform_1, window_bounds = array<i64: 8, 128>}, {transform_indices = @transform_2, window_bounds = array<i64: 8, 1>}, {transform_indices = @transform_3, window_bounds = array<i64: 8, 1>}, {transform_indices = @transform_4, window_bounds = array<i64: 8, 1>}, {transform_indices = @transform_5, window_bounds = array<i64: 8, 1>}]} {
    %c0_i32 = arith.constant 0 : i32
    %0 = arith.cmpi eq, %arg1, %c0_i32 : i32
    %1 = arith.extui %0 : i1 to i32
    %c0_i32_0 = arith.constant 0 : i32
    %2 = arith.cmpi ne, %1, %c0_i32_0 : i32
    scf.if %2 {
      %cst = arith.constant 0.000000e+00 : f32
      %16 = vector.broadcast %cst : f32 to vector<8x128xf32>
      %c0_14 = arith.constant 0 : index
      %c0_15 = arith.constant 0 : index
      %17 = vector.load %arg8[%c0_14, %c0_15] : memref<8x128xf32, #tpu.memory_space<vmem>>, vector<8x128xf32>
      tpu.vector_store %arg8[%c0_14, %c0_15], %16 {strides = array<i32>} : memref<8x128xf32, #tpu.memory_space<vmem>>, vector<8x128xf32>,
      %cst_16 = arith.constant 0.000000e+00 : f32
      %18 = vector.broadcast %cst_16 : f32 to vector<8x128xf32>
      %c0_17 = arith.constant 0 : index
      %c0_18 = arith.constant 0 : index
      %19 = vector.load %arg9[%c0_17, %c0_18] : memref<8x128xf32, #tpu.memory_space<vmem>>, vector<8x128xf32>
      tpu.vector_store %arg9[%c0_17, %c0_18], %18 {strides = array<i32>} : memref<8x128xf32, #tpu.memory_space<vmem>>, vector<8x128xf32>,
    } else {
    }
    %c0 = arith.constant 0 : index
    %c0_1 = arith.constant 0 : index
    %3 = vector.load %arg2[%c0, %c0_1] : memref<8x128xf32, #tpu.memory_space<vmem>>, vector<8x128xf32>
    %c0_2 = arith.constant 0 : index
    %c0_3 = arith.constant 0 : index
    %4 = vector.load %arg3[%c0_2, %c0_3] : memref<8x128xf32, #tpu.memory_space<vmem>>, vector<8x128xf32>
    %5 = arith.addf %3, %4 : vector<8x128xf32>
    %c0_4 = arith.constant 0 : index
    %c0_5 = arith.constant 0 : index
    %6 = vector.load %arg8[%c0_4, %c0_5] : memref<8x128xf32, #tpu.memory_space<vmem>>, vector<8x128xf32>
    %c0_6 = arith.constant 0 : index
    %c0_7 = arith.constant 0 : index
    %7 = vector.load %arg9[%c0_6, %c0_7] : memref<8x128xf32, #tpu.memory_space<vmem>>, vector<8x128xf32>
    %8 = arith.addf %6, %5 : vector<8x128xf32>
    %9 = arith.mulf %5, %5 : vector<8x128xf32>
    %10 = arith.addf %7, %9 : vector<8x128xf32>
    %c0_8 = arith.constant 0 : index
    %c0_9 = arith.constant 0 : index
    %11 = vector.load %arg8[%c0_8, %c0_9] : memref<8x128xf32, #tpu.memory_space<vmem>>, vector<8x128xf32>
    tpu.vector_store %arg8[%c0_8, %c0_9], %8 {strides = array<i32>} : memref<8x128xf32, #tpu.memory_space<vmem>>, vector<8x128xf32>,
    %c0_10 = arith.constant 0 : index
    %c0_11 = arith.constant 0 : index
    %12 = vector.load %arg9[%c0_10, %c0_11] : memref<8x128xf32, #tpu.memory_space<vmem>>, vector<8x128xf32>
    tpu.vector_store %arg9[%c0_10, %c0_11], %10 {strides = array<i32>} : memref<8x128xf32, #tpu.memory_space<vmem>>, vector<8x128xf32>,
    %c0_i32_12 = arith.constant 0 : i32
    %13 = arith.cmpi eq, %arg1, %c0_i32_12 : i32
    %14 = arith.extui %13 : i1 to i32
    %c0_i32_13 = arith.constant 0 : i32
    %15 = arith.cmpi ne, %14, %c0_i32_13 : i32
    scf.if %15 {
      %c0_14 = arith.constant 0 : index
      %c0_15 = arith.constant 0 : index
      %16 = vector.load %arg8[%c0_14, %c0_15] : memref<8x128xf32, #tpu.memory_space<vmem>>, vector<8x128xf32>
      %cst = arith.constant dense<0.000000e+00> : vector<8xf32>
      %17 = vector.multi_reduction <add>, %16, %cst [1] : vector<8x128xf32> to vector<8xf32>
      %18 = vector.shape_cast %17 : vector<8xf32> to vector<8x1xf32>
      %c0_16 = arith.constant 0 : index
      %c0_17 = arith.constant 0 : index
      %19 = vector.load %arg9[%c0_16, %c0_17] : memref<8x128xf32, #tpu.memory_space<vmem>>, vector<8x128xf32>
      %cst_18 = arith.constant dense<0.000000e+00> : vector<8xf32>
      %20 = vector.multi_reduction <add>, %19, %cst_18 [1] : vector<8x128xf32> to vector<8xf32>
      %21 = vector.shape_cast %20 : vector<8xf32> to vector<8x1xf32>
      %cst_19 = arith.constant 3.125000e-02 : f32
      %22 = vector.broadcast %cst_19 : f32 to vector<8x1xf32>
      %23 = arith.mulf %18, %22 : vector<8x1xf32>
      %cst_20 = arith.constant 3.125000e-02 : f32
      %24 = vector.broadcast %cst_20 : f32 to vector<8x1xf32>
      %25 = arith.mulf %21, %24 : vector<8x1xf32>
      %26 = arith.mulf %23, %23 : vector<8x1xf32>
      %27 = arith.subf %25, %26 : vector<8x1xf32>
      %cst_21 = arith.constant 0.000000e+00 : f32
      %28 = vector.broadcast %cst_21 : f32 to vector<8x1xf32>
      %29 = arith.maximumf %27, %28 : vector<8x1xf32>
      %cst_22 = arith.constant 9.99999974E-6 : f32
      %30 = vector.broadcast %cst_22 : f32 to vector<8x1xf32>
      %31 = arith.addf %29, %30 : vector<8x1xf32>
      %32 = math.rsqrt %31 : vector<8x1xf32>
      %c0_23 = arith.constant 0 : index
      %c0_24 = arith.constant 0 : index
      %33 = vector.load %arg4[%c0_23, %c0_24] : memref<8x1xf32, #tpu.memory_space<vmem>>, vector<8x1xf32>
      %34 = arith.mulf %33, %32 : vector<8x1xf32>
      %c0_25 = arith.constant 0 : index
      %c0_26 = arith.constant 0 : index
      %35 = vector.load %arg6[%c0_25, %c0_26] : memref<8x1xf32, #tpu.memory_space<vmem>>, vector<8x1xf32>
      tpu.vector_store %arg6[%c0_25, %c0_26], %34 {strides = array<i32>} : memref<8x1xf32, #tpu.memory_space<vmem>>, vector<8x1xf32>,
      %c0_27 = arith.constant 0 : index
      %c0_28 = arith.constant 0 : index
      %36 = vector.load %arg5[%c0_27, %c0_28] : memref<8x1xf32, #tpu.memory_space<vmem>>, vector<8x1xf32>
      %37 = arith.mulf %23, %34 : vector<8x1xf32>
      %38 = arith.subf %36, %37 : vector<8x1xf32>
      %c0_29 = arith.constant 0 : index
      %c0_30 = arith.constant 0 : index
      %39 = vector.load %arg7[%c0_29, %c0_30] : memref<8x1xf32, #tpu.memory_space<vmem>>, vector<8x1xf32>
      tpu.vector_store %arg7[%c0_29, %c0_30], %38 {strides = array<i32>} : memref<8x1xf32, #tpu.memory_space<vmem>>, vector<8x1xf32>,
    } else {
    }
    return
  }
  func.func @transform_0(%arg0: i32, %arg1: i32) -> (i32, i32) {
    %c0_i32 = arith.constant 0 : i32
    return %arg0, %arg1 : i32, i32
  }
  func.func @transform_1(%arg0: i32, %arg1: i32) -> (i32, i32) {
    %c0_i32 = arith.constant 0 : i32
    return %arg0, %arg1 : i32, i32
  }
  func.func @transform_2(%arg0: i32, %arg1: i32) -> (i32, i32) {
    %c0_i32 = arith.constant 0 : i32
    %c0_i32_0 = arith.constant 0 : i32
    return %arg0, %c0_i32 : i32, i32
  }
  func.func @transform_3(%arg0: i32, %arg1: i32) -> (i32, i32) {
    %c0_i32 = arith.constant 0 : i32
    %c0_i32_0 = arith.constant 0 : i32
    return %arg0, %c0_i32 : i32, i32
  }
  func.func @transform_4(%arg0: i32, %arg1: i32) -> (i32, i32) {
    %c0_i32 = arith.constant 0 : i32
    %c0_i32_0 = arith.constant 0 : i32
    return %arg0, %c0_i32 : i32, i32
  }
  func.func @transform_5(%arg0: i32, %arg1: i32) -> (i32, i32) {
    %c0_i32 = arith.constant 0 : i32
    %c0_i32_0 = arith.constant 0 : i32
    return %arg0, %c0_i32 : i32, i32
  }
}

</mosaic_0001>

<bundles_post_ra>
// kernel: _fuse_amp_to_phase_impl.2
= control target key start
LH: loop header
LB: loop body
LE: loop exit
PB: predicated region body
PF: predicated region fallthrough
CT: control target
= control target key end

     0   :  { %vm53_vm0 = vcmask 7168   ;;  %s117_s0 = inlined_call_operand.vmem [shape: f32[8,128], index: 0, kind: input, shape index: {}]   ;;  %s118_s1 = inlined_call_operand.vmem [shape: f32[8,128], index: 1, kind: input, shape index: {}]   ;;  %s119_s2 = inlined_call_operand.vmem [shape: f32[8,1], index: 2, kind: input, shape index: {}]   ;;  %s120_s3 = inlined_call_operand.vmem [shape: f32[8,1], index: 3, kind: input, shape index: {}]   ;;  %s121_s4 = inlined_call_operand.vmem [shape: f32[8,1], index: 4, kind: output, shape index: {0}]   ;;  %s122_s5 = inlined_call_operand.vmem [shape: f32[8,1], index: 5, kind: output, shape index: {1}]  }
   0x1   :  { %v25_v0 = vld [vmem:[%s117_s0] sm:$0xff] }
   0x2   :  { %v26_v1 = vld [vmem:[%s118_s1] sm:$0xff] }
   0x3   :  { %v27_v2 = vadd.f32 %v26_v1, %v25_v0  ;;  %v51_v12 = vld [vmem:[%s119_s2] sm:$0xff] }
   0x4   :  { %v55_v15 = vld [vmem:[%s120_s3] sm:$0xff] }
   0x5   :  { %39 = vadd.xlane.f32.xlu0 %v27_v2  ;;  %v31_v3 = vmul.f32 %v27_v2, %v27_v2 }
   0x9   :  { %42 = vadd.xlane.f32.xlu0 %v31_v3 }
  0x8e   :  { %v40_v4 = vpop.xlane.xlu0 %39 }
  0x8f   :  { %v44_v5 = vmul.f32 0.03125, %v40_v4 }
  0x91   :  { %v46_v7 = vmul.f32 %v44_v5, %v44_v5 }
  0x92   :  { %v43_v6 = vpop.xlane.xlu0 %42 }
  0x93   :  { %v45_v8 = vmul.f32 0.03125, %v43_v6 }
  0x95   :  { %v47_v9 = vsub.f32 %v45_v8, %v46_v7 }
  0x97   :  { %v48_v10 = vmax.f32 %v47_v9, 0.0 }
  0x99   :  { %v49_v11 = vadd.f32 1e-05, %v48_v10 }
  0x9b   :  { %67 = vrsqrt.f32 %v49_v11 }
  0xa8   :  { %v68_v13 = vpop.eup %67 }
  0xa9   :  { %v52_v14 = vmul.f32 %v68_v13, %v51_v12 }
  0xab   :  { %54 = vst.msk [vmem:[%s121_s4] sm:$0xff] %vm53_vm0, %v52_v14  ;;  %v56_v16 = vmul.f32 %v52_v14, %v44_v5 }
  0xad   :  { %v57_v17 = vsub.f32 %v55_v15, %v56_v16 }
  0xaf   :  { %58 = vst.msk [vmem:[%s122_s5] sm:$0xff] %vm53_vm0, %v57_v17 }

// kernel: _fuse_amp_to_phase_impl.3
= control target key start
LH: loop header
LB: loop body
LE: loop exit
PB: predicated region body
PF: predicated region fallthrough
CT: control target
= control target key end

     0   :  { %v42_v0 = vmov 0   ;;  %s83_s2 = inlined_call_operand.vmem [shape: f32[8,1], index: 2, kind: input, shape index: {}]   ;;  %s84_s3 = inlined_call_operand.vmem [shape: f32[8,1], index: 3, kind: input, shape index: {}]   ;;  %s85_s0 = inlined_call_operand.vmem [shape: f32[8,128], index: 0, kind: input, shape index: {}]   ;;  %s86_s1 = inlined_call_operand.vmem [shape: f32[8,128], index: 1, kind: input, shape index: {}]   ;;  %s87_s4 = inlined_call_operand.vmem [shape: f32[8,128], index: 4, kind: output, shape index: {}]  }
   0x1   :  { %41 = vset.pattern.permute.xlu0 %v42_v0  ;;  %v20_v1 = vld [vmem:[%s83_s2] sm:$0xff] }
   0x2   :  { %23 = vperm.xlu0 %41, %v20_v1   ;;  %v27_v2 = vld [vmem:[%s84_s3] sm:$0xff] }
   0x3   :  { %v17_v3 = vld [vmem:[%s85_s0] sm:$0xff] }
   0x4   :  { %v18_v4 = vld [vmem:[%s86_s1] sm:$0xff] }
   0x5   :  { %v19_v5 = vadd.f32 %v18_v4, %v17_v3 }
   0x6   :  { %30 = vperm.xlu0 %41, %v27_v2  }
  0x7d   :  { %v24_v6 = vpop.permute.xlu0 %23 }
  0x7e   :  { %v26_v7 = vmul.f32 %v24_v6, %v19_v5 }
  0x81   :  { %v31_v8 = vpop.permute.xlu0 %30 }
  0x82   :  { %v33_v9 = vadd.f32 %v31_v8, %v26_v7 }
  0x84   :  { %v34_v10 = vmax.f32 %v33_v9, 0.0 }
  0x86   :  { %35 = vst [vmem:[%s87_s4] sm:$0xff] %v34_v10 }

</bundles_post_ra>
